<compile_context>
chip_gen: v6e
topology: v6e:2x2x1
jax: 0.10.0
libtpu: 0.0.40
codegen_flags: <defaults>
</compile_context>

<pallas_src>
import functools
import math

import jax
import jax.numpy as jnp
import numpy as np
from jax.experimental import pallas as pl
from jax.experimental.pallas import tpu as pltpu


# --------------------------------------------------------------------------
# Hardware-aware knobs
# --------------------------------------------------------------------------
def _round_up(x, m):
    return (x + m - 1) // m * m


def _vmem_limit_bytes():
    try:
        cap = int(pltpu.get_tpu_info().vmem_capacity_bytes)
    except Exception:
        cap = 64 * 1024 * 1024          # conservative fallback == v7x per-TC VMEM
    # Keep the scoped limit comfortably under physical VMEM on every generation
    # (48 MiB on v7x, 56 MiB on v5e/v6e). Worst-case tile set here is ~10 MiB.
    return min(56 * 1024 * 1024, (cap * 3) // 4)


def _num_tensorcores():
    # Only v7x exposes 2 TensorCores per chip worth sharding the N axis over.
    try:
        kind = jax.devices()[0].device_kind.lower()
    except Exception:
        return 1
    return 2 if ("v7" in kind or "tpu7" in kind) else 1


_VMEM_LIMIT = _vmem_limit_bytes()
_NUM_TC = _num_tensorcores()
_TK_SINGLE_MAX = 8192        # padded K up to this -> single K step (no reduction grid axis)


# ----------------------------- Pallas kernels -----------------------------

def _gemm_bn_single_kernel(*refs, relu, has_res):
    """Single-K-step GEMM + folded BatchNorm(eval) + optional fused residual + ReLU.
    bf16 MXU operands, f32 epilogue (v5e has no bf16 VPU), bf16 store."""
    if has_res:
        x_ref, w_ref, scale_ref, shift_ref, res_ref, o_ref = refs
    else:
        x_ref, w_ref, scale_ref, shift_ref, o_ref = refs
        res_ref = None
    y = jnp.dot(x_ref[...], w_ref[...], preferred_element_type=jnp.float32)
    y = y * scale_ref[...] + shift_ref[...]
    if has_res:
        y = y + res_ref[...].astype(jnp.float32)
    if relu:
        y = jnp.maximum(y, 0.0)
    o_ref[...] = y.astype(o_ref.dtype)


def _gemm_bn_kloop_kernel(*refs, relu, has_res):
    """General K-looped variant with a resident f32 VMEM accumulator (only used
    when padded K exceeds _TK_SINGLE_MAX; not hit at these shapes)."""
    if has_res:
        x_ref, w_ref, scale_ref, shift_ref, res_ref, o_ref, acc_ref = refs
    else:
        x_ref, w_ref, scale_ref, shift_ref, o_ref, acc_ref = refs
        res_ref = None

    @pl.when(pl.program_id(2) == 0)
    def _():
        acc_ref[...] = jnp.zeros_like(acc_ref)

    acc_ref[...] += jnp.dot(x_ref[...], w_ref[...], preferred_element_type=jnp.float32)

    @pl.when(pl.program_id(2) == pl.num_programs(2) - 1)
    def _():
        y = acc_ref[...] * scale_ref[...] + shift_ref[...]
        if has_res:
            y = y + res_ref[...].astype(jnp.float32)
        if relu:
            y = jnp.maximum(y, 0.0)
        o_ref[...] = y.astype(o_ref.dtype)


def mm_bn_act(x, w, scale, shift, *, relu, res=None):
    """act((x @ w) * scale + shift (+ res)) with weights pre-padded at init.

    w:          (kp, np_) bf16, K and N already padded to multiples of 128.
    scale/shift:(1, np_)  f32, padded at init (zeros on padded columns).
    x:          (m, k) with k <= kp; zero-padded to kp if needed (stem only).
    res:        optional (m, np_) residual (bf16).
    Returns (m, np_) bf16; padded output channels are exactly zero.
    """
    m, k = x.shape
    kp, np_ = w.shape
    assert k <= kp and kp % 128 == 0 and np_ % 128 == 0

    # --- tile selection: the workload is latency/weight-DMA bound, so aim for a single grid step.
    if m <= 512:
        mp = _round_up(m, 16)
        tm = mp
    else:
        mp = _round_up(m, 256)
        tm = 256
    if kp <= _TK_SINGLE_MAX:
        tk = kp
    else:
        tk = 512 if kp % 512 == 0 else 128
    if _NUM_TC >= 2 and mp == tm and np_ >= 512 and (np_ // 2) % 128 == 0:
        tn = np_ // 2            # v7x: one N tile per TensorCore
    elif np_ <= 2048:
        tn = np_
    else:
        tn = 1024 if np_ % 1024 == 0 else (512 if np_ % 512 == 0 else 128)

    if (mp, kp) != (m, k):
        x = jnp.pad(x, ((0, mp - m), (0, kp - k)))
    xb = x.astype(jnp.bfloat16)

    inputs = [xb, w, scale, shift]
    has_res = res is not None
    if has_res:
        if mp != m:
            res = jnp.pad(res, ((0, mp - m), (0, 0)))
        inputs.append(res.astype(jnp.bfloat16))

    gk = kp // tk
    if gk == 1:
        in_specs = [
            pl.BlockSpec((tm, tk), lambda i, j: (i, 0)),
            pl.BlockSpec((tk, tn), lambda i, j: (0, j)),
            pl.BlockSpec((1, tn), lambda i, j: (0, j)),
            pl.BlockSpec((1, tn), lambda i, j: (0, j)),
        ]
        if has_res:
            in_specs.append(pl.BlockSpec((tm, tn), lambda i, j: (i, j)))
        out = pl.pallas_call(
            functools.partial(_gemm_bn_single_kernel, relu=relu, has_res=has_res),
            out_shape=jax.ShapeDtypeStruct((mp, np_), jnp.bfloat16),
            grid_spec=pltpu.PrefetchScalarGridSpec(
                num_scalar_prefetch=0,
                grid=(mp // tm, np_ // tn),
                in_specs=in_specs,
                out_specs=pl.BlockSpec((tm, tn), lambda i, j: (i, j)),
            ),
            compiler_params=pltpu.CompilerParams(
                dimension_semantics=("parallel", "parallel"),
                vmem_limit_bytes=_VMEM_LIMIT,
            ),
        )(*inputs)
    else:
        in_specs = [
            pl.BlockSpec((tm, tk), lambda i, j, kk: (i, kk)),
            pl.BlockSpec((tk, tn), lambda i, j, kk: (kk, j)),
            pl.BlockSpec((1, tn), lambda i, j, kk: (0, j)),
            pl.BlockSpec((1, tn), lambda i, j, kk: (0, j)),
        ]
        if has_res:
            in_specs.append(pl.BlockSpec((tm, tn), lambda i, j, kk: (i, j)))
        out = pl.pallas_call(
            functools.partial(_gemm_bn_kloop_kernel, relu=relu, has_res=has_res),
            out_shape=jax.ShapeDtypeStruct((mp, np_), jnp.bfloat16),
            grid_spec=pltpu.PrefetchScalarGridSpec(
                num_scalar_prefetch=0,
                grid=(mp // tm, np_ // tn, gk),
                in_specs=in_specs,
                out_specs=pl.BlockSpec((tm, tn), lambda i, j, kk: (i, j)),
                scratch_shapes=[pltpu.VMEM((tm, tn), jnp.float32)],
            ),
            compiler_params=pltpu.CompilerParams(
                dimension_semantics=("parallel", "parallel", "arbitrary"),
                vmem_limit_bytes=_VMEM_LIMIT,
            ),
        )(*inputs)

    if mp != m:
        out = out[:m]
    return out


def _head_kernel(feat_ref, w_ref, b_ref, o_ref):
    # Whole head collapsed at init to one (B,2048)@(2048,Cp) GEMM + bias + sigmoid.
    y = jnp.dot(feat_ref[...], w_ref[...], preferred_element_type=jnp.float32) + b_ref[...]
    o_ref[...] = 1.0 / (1.0 + jnp.exp(-y))


def head_pallas(feat, w_total, b_total):
    b, d = feat.shape
    cp = w_total.shape[1]
    return pl.pallas_call(
        _head_kernel,
        out_shape=jax.ShapeDtypeStruct((b, cp), jnp.float32),
        grid_spec=pltpu.PrefetchScalarGridSpec(
            num_scalar_prefetch=0,
            grid=(1,),
            in_specs=[
                pl.BlockSpec((b, d), lambda i: (0, 0)),
                pl.BlockSpec((d, cp), lambda i: (0, 0)),
                pl.BlockSpec((1, cp), lambda i: (0, 0)),
            ],
            out_specs=pl.BlockSpec((b, cp), lambda i: (0, 0)),
        ),
        compiler_params=pltpu.CompilerParams(
            dimension_semantics=("arbitrary",),
            vmem_limit_bytes=_VMEM_LIMIT,
        ),
    )(feat.astype(jnp.bfloat16), w_total, b_total)


# ----------------------------- glue (im2col / pooling) -----------------------------

def im2col_nhwc(x, kh, kw, stride, pad):
    """NHWC im2col: (B,H,W,C) -> (B*Ho*Wo, kh*kw*C), channels on the lane axis.
    Runs inside the same jit as the GEMM so XLA fuses the patch extraction."""
    # TODO(synk): maxpool, global average pool and this im2col remain plain-JAX glue;
    # fusing the 3x3 window shifts into the GEMM grid would save one HBM round-trip per 3x3 conv.
    b, h, w, c = x.shape
    if kh == 1 and kw == 1 and pad == 0:
        xs = x[:, ::stride, ::stride, :]
        _, ho, wo, _ = xs.shape
        return xs.reshape(b * ho * wo, c), ho, wo
    xp = jnp.pad(x, ((0, 0), (pad, pad), (pad, pad), (0, 0)))
    hp, wp = xp.shape[1], xp.shape[2]
    ho = (hp - kh) // stride + 1
    wo = (wp - kw) // stride + 1
    patches = []
    for i in range(kh):
        for j in range(kw):
            patches.append(xp[:, i:i + stride * ho:stride, j:j + stride * wo:stride, :])
    col = jnp.concatenate(patches, axis=-1)          # (B, Ho, Wo, kh*kw*C)
    return col.reshape(b * ho * wo, kh * kw * c), ho, wo


def conv_bn(x, w_gemm, scale, shift, *, kh, kw, stride, pad, relu, res=None):
    b = x.shape[0]
    cols, ho, wo = im2col_nhwc(x, kh, kw, stride, pad)
    out = mm_bn_act(cols, w_gemm, scale, shift, relu=relu, res=res)
    return out.reshape(b, ho, wo, w_gemm.shape[1])


def maxpool_3x3_s2_p1(x):
    init = jnp.asarray(-jnp.inf, dtype=x.dtype)
    return jax.lax.reduce_window(
        x, init, jax.lax.max,
        window_dimensions=(1, 3, 3, 1),
        window_strides=(1, 2, 2, 1),
        padding=((0, 0), (1, 1), (1, 1), (0, 0)))


# ----------------------------- forward pass -----------------------------

RESNET101_LAYERS = ((64, 3, 1), (128, 4, 2), (256, 23, 2), (512, 3, 2))


@jax.jit
def stem_forward(x, p):
    h = conv_bn(x, p["w"], p["s"], p["b"], kh=7, kw=7, stride=2, pad=3, relu=True)
    return maxpool_3x3_s2_p1(h)


@functools.partial(jax.jit, static_argnames=("stride", "has_down"))
def bottleneck_forward(x, p, *, stride, has_down):
    out = conv_bn(x, p["w1"], p["s1"], p["b1"], kh=1, kw=1, stride=1, pad=0, relu=True)
    out = conv_bn(out, p["w2"], p["s2"], p["b2"], kh=3, kw=3, stride=stride, pad=1, relu=True)
    if has_down:
        ident = conv_bn(x, p["wd"], p["sd"], p["bd"], kh=1, kw=1, stride=stride, pad=0, relu=False)
    else:
        ident = x
    bsz, ho, wo, c = ident.shape
    # Residual add + ReLU fused into the conv3 GEMM epilogue.
    # TODO(synk): conv3 here and conv1 of the next block could be chained in one kernel launch.
    return conv_bn(out, p["w3"], p["s3"], p["b3"], kh=1, kw=1, stride=1, pad=0,
                   relu=True, res=ident.reshape(bsz * ho * wo, c))


@functools.partial(jax.jit, static_argnames=("num_classes",))
def head_forward(h, p, num_classes):
    feat = jnp.mean(h.astype(jnp.float32), axis=(1, 2))     # global avg pool; resnet.fc = Identity
    out = head_pallas(feat, p["w"], p["b"])
    return out[:, :num_classes]


def gcn_resnet_forward(x_nchw, params, num_classes):
    # Input is NCHW to match PyTorch; the backbone runs channels-last internally.
    h = stem_forward(jnp.transpose(x_nchw, (0, 2, 3, 1)), params["stem"])
    in_ch = 64
    for (width, _n_blocks, layer_stride), layer_params in zip(RESNET101_LAYERS, params["layers"]):
        for bi, blk in enumerate(layer_params):
            s = layer_stride if bi == 0 else 1
            has_down = (s != 1) or (in_ch != width * 4)
            h = bottleneck_forward(h, blk, stride=s, has_down=has_down)
            in_ch = width * 4
    return head_forward(h, params["head"], num_classes)


# ----------------------------- parameter construction -----------------------------

class KeyGen:
    def __init__(self, seed):
        self.key = jax.random.PRNGKey(seed)

    def __call__(self):
        self.key, sub = jax.random.split(self.key)
        return sub


def conv_init(kg, cout, cin, k):
    fan_out = cout * k * k
    std = math.sqrt(2.0 / fan_out)
    return jax.random.normal(kg(), (cout, cin, k, k), jnp.float32) * std


def conv_to_gemm(w, pad_cin=True):
    """PyTorch (Cout,Cin,kh,kw) -> im2col GEMM layout (kh*kw*Cin_p, Cout_p), padded + bf16 at init.
    pad_cin=True pads the input-channel axis per patch so the weight matches channel-padded
    activations kept padded end-to-end in the pipeline."""
    cout, cin, kh, kw = w.shape
    cin_p = _round_up(cin, 128) if pad_cin else cin
    cout_p = _round_up(cout, 128)
    wp = jnp.pad(w, ((0, cout_p - cout), (0, cin_p - cin), (0, 0), (0, 0)))
    wg = jnp.transpose(wp, (2, 3, 1, 0)).reshape(kh * kw * cin_p, cout_p)
    kp = _round_up(wg.shape[0], 128)
    if kp != wg.shape[0]:
        wg = jnp.pad(wg, ((0, kp - wg.shape[0]), (0, 0)))
    return wg.astype(jnp.bfloat16)


def xavier_uniform(kg, shape):
    fan_in, fan_out = shape
    bound = math.sqrt(6.0 / (fan_in + fan_out))
    return jax.random.uniform(kg(), shape, jnp.float32, -bound, bound)


def bn_identity(c):
    # nn.BatchNorm2d default init in eval mode: gamma=1, beta=0, mean=0, var=1, eps=1e-5.
    # Padded columns get scale=0, shift=0 so padded output channels are exactly zero.
    cp = _round_up(c, 128)
    scale = jnp.zeros((1, cp), jnp.float32).at[:, :c].set(1.0 / math.sqrt(1.0 + 1e-5))
    shift = jnp.zeros((1, cp), jnp.float32)
    return scale, shift


def make_bottleneck(kg, in_ch, width, stride):
    p = {"w1": conv_to_gemm(conv_init(kg, width, in_ch, 1))}
    p["s1"], p["b1"] = bn_identity(width)
    p["w2"] = conv_to_gemm(conv_init(kg, width, width, 3))
    p["s2"], p["b2"] = bn_identity(width)
    p["w3"] = conv_to_gemm(conv_init(kg, width * 4, width, 1))
    p["s3"], p["b3"] = bn_identity(width * 4)
    if stride != 1 or in_ch != width * 4:
        p["wd"] = conv_to_gemm(conv_init(kg, width * 4, in_ch, 1))
        p["sd"], p["bd"] = bn_identity(width * 4)
    return p


def init_resnet101(kg):
    # Stem input has 3 (unpadded) channels, so its GEMM K is padded only at the tail.
    stem = {"w": conv_to_gemm(conv_init(kg, 64, 3, 7), pad_cin=False)}
    stem["s"], stem["b"] = bn_identity(64)
    layers = []
    in_ch = 64
    for width, n_blocks, stride in RESNET101_LAYERS:
        layer = []
        for bi in range(n_blocks):
            s = stride if bi == 0 else 1
            layer.append(make_bottleneck(kg, in_ch, width, s))
            in_ch = width * 4
        layers.append(layer)
    return stem, layers


def init_head(kg, num_classes, adj):
    bound = 1.0 / math.sqrt(2048.0)
    fc_w = jax.random.uniform(kg(), (2048, 2048), jnp.float32, -bound, bound)   # (out, in)
    fc_b = jax.random.uniform(kg(), (2048,), jnp.float32, -bound, bound)
    asge_w = xavier_uniform(kg, (2048, num_classes))
    gcn_w = xavier_uniform(kg, (num_classes, num_classes))
    # No nonlinearity anywhere in the head -> collapse everything once at init:
    #   sigmoid(((x @ fc_w.T + fc_b) @ asge_w @ A @ gcn_w) @ A)
    #     == sigmoid(x @ (fc_w.T @ M) + fc_b @ M),  M = asge_w @ A @ gcn_w @ A
    m_head = asge_w @ adj @ gcn_w @ adj                       # (2048, C)
    w_total = fc_w.T @ m_head                                  # (2048, C)
    b_total = fc_b @ m_head                                    # (C,)
    cp = _round_up(num_classes, 128)
    w_total = jnp.pad(w_total, ((0, 0), (0, cp - num_classes))).astype(jnp.bfloat16)
    b_total = jnp.pad(b_total, ((0, cp - num_classes),)).reshape(1, cp).astype(jnp.float32)
    return {"w": w_total, "b": b_total}


def gen_A_synthetic(num_classes, t, seed):
    # Same math as gen_A(), but with synthetic deterministic co-occurrence stats (no pickle file).
    rng = np.random.RandomState(seed)
    _adj = rng.uniform(size=(num_classes, num_classes)).astype(np.float64)
    _nums = rng.randint(1, 10, size=(num_classes,)).astype(np.float64)
    _nums = _nums[:, np.newaxis]
    _adj = _adj / _nums
    _adj[_adj < t] = 0
    _adj[_adj >= t] = 1
    _adj = _adj * 0.25 / (_adj.sum(0, keepdims=True) + 1e-06)
    _adj = _adj + np.identity(num_classes, np.int64)
    return jnp.asarray(_adj, dtype=jnp.float32)


# ----------------------------- main -----------------------------

if __name__ == "__main__":
    num_classes = 16
    B, H, W = 2, 32, 32

    kg = KeyGen(0)
    x = jax.random.normal(kg(), (B, 3, H, W), jnp.float32)

    stem, layers = init_resnet101(kg)
    adj = gen_A_synthetic(num_classes, 0.4, seed=1234)
    params = {
        "stem": stem,
        "layers": layers,
        "head": init_head(kg, num_classes, adj),
    }

    out = gcn_resnet_forward(x, params, num_classes)
    out = jax.block_until_ready(out)

    assert out.shape == (B, num_classes), out.shape
    assert out.dtype == jnp.float32
    assert bool(jnp.all(jnp.isfinite(out)))
    assert bool(jnp.all((out >= 0.0) & (out <= 1.0)))   # sigmoid output
    print("KERNEL_OK")
</pallas_src>

<mosaic_0001>
module attributes {stable_mosaic.version = 11 : i64} {
  func.func @_gemm_bn_single_kernel(%arg0: i32, %arg1: i32, %arg2: memref<512x256xbf16, #tpu.memory_space<vmem>>, %arg3: memref<256x128xbf16, #tpu.memory_space<vmem>>, %arg4: memref<1x128xf32, #tpu.memory_space<vmem>>, %arg5: memref<1x128xf32, #tpu.memory_space<vmem>>, %arg6: memref<512x128xbf16, #tpu.memory_space<vmem>>) attributes {dimension_semantics = [#tpu.dimension_semantics<parallel>, #tpu.dimension_semantics<parallel>], iteration_bounds = array<i64: 1, 1>, scalar_prefetch = 0 : i64, scratch_operands = 0 : i64, tpu.core_type = #tpu.core_type<tc>, window_params = [{transform_indices = @transform_0, window_bounds = array<i64: 512, 256>}, {transform_indices = @transform_1, window_bounds = array<i64: 256, 128>}, {transform_indices = @transform_2, window_bounds = array<i64: 1, 128>}, {transform_indices = @transform_3, window_bounds = array<i64: 1, 128>}, {transform_indices = @transform_4, window_bounds = array<i64: 512, 128>}]} {
    %c0 = arith.constant 0 : index
    %c0_0 = arith.constant 0 : index
    %0 = vector.load %arg2[%c0, %c0_0] : memref<512x256xbf16, #tpu.memory_space<vmem>>, vector<512x256xbf16>
    %c0_1 = arith.constant 0 : index
    %c0_2 = arith.constant 0 : index
    %1 = vector.load %arg3[%c0_1, %c0_2] : memref<256x128xbf16, #tpu.memory_space<vmem>>, vector<256x128xbf16>
    %cst = arith.constant dense<0.000000e+00> : vector<512x128xf32>
    %2 = tpu.matmul %0, %1, %cst {dimension_numbers = #tpu.dot_dimension_numbers<[1], [0], [0], [1], [0, 0, 1, 1], [], []>} : vector<512x256xbf16>, vector<256x128xbf16>, vector<512x128xf32> -> vector<512x128xf32>
    %c0_3 = arith.constant 0 : index
    %c0_4 = arith.constant 0 : index
    %3 = vector.load %arg4[%c0_3, %c0_4] : memref<1x128xf32, #tpu.memory_space<vmem>>, vector<1x128xf32>
    %4 = vector.broadcast %3 : vector<1x128xf32> to vector<512x128xf32>
    %5 = arith.mulf %2, %4 : vector<512x128xf32>
    %c0_5 = arith.constant 0 : index
    %c0_6 = arith.constant 0 : index
    %6 = vector.load %arg5[%c0_5, %c0_6] : memref<1x128xf32, #tpu.memory_space<vmem>>, vector<1x128xf32>
    %7 = vector.broadcast %6 : vector<1x128xf32> to vector<512x128xf32>
    %8 = arith.addf %5, %7 : vector<512x128xf32>
    %cst_7 = arith.constant 0.000000e+00 : f32
    %9 = vector.broadcast %cst_7 : f32 to vector<512x128xf32>
    %10 = arith.maximumf %8, %9 : vector<512x128xf32>
    %11 = arith.truncf %10 : vector<512x128xf32> to vector<512x128xbf16>
    %c0_8 = arith.constant 0 : index
    %c0_9 = arith.constant 0 : index
    %12 = vector.load %arg6[%c0_8, %c0_9] : memref<512x128xbf16, #tpu.memory_space<vmem>>, vector<512x128xbf16>
    tpu.vector_store %arg6[%c0_8, %c0_9], %11 {strides = array<i32>} : memref<512x128xbf16, #tpu.memory_space<vmem>>, vector<512x128xbf16>,
    return
  }
  func.func @transform_0(%arg0: i32, %arg1: i32) -> (i32, i32) {
    %c0_i32 = arith.constant 0 : i32
    %c0_i32_0 = arith.constant 0 : i32
    return %arg0, %c0_i32 : i32, i32
  }
  func.func @transform_1(%arg0: i32, %arg1: i32) -> (i32, i32) {
    %c0_i32 = arith.constant 0 : i32
    %c0_i32_0 = arith.constant 0 : i32
    return %c0_i32, %arg1 : i32, i32
  }
  func.func @transform_2(%arg0: i32, %arg1: i32) -> (i32, i32) {
    %c0_i32 = arith.constant 0 : i32
    %c0_i32_0 = arith.constant 0 : i32
    return %c0_i32, %arg1 : i32, i32
  }
  func.func @transform_3(%arg0: i32, %arg1: i32) -> (i32, i32) {
    %c0_i32 = arith.constant 0 : i32
    %c0_i32_0 = arith.constant 0 : i32
    return %c0_i32, %arg1 : i32, i32
  }
  func.func @transform_4(%arg0: i32, %arg1: i32) -> (i32, i32) {
    %c0_i32 = arith.constant 0 : i32
    return %arg0, %arg1 : i32, i32
  }
}

</mosaic_0001>

<bundles_post_ra>
// kernel: stem_forward.1
= control target key start
LH: loop header
LB: loop body
LE: loop exit
PB: predicated region body
PF: predicated region fallthrough
CT: control target
= control target key end

     0   :  { %v1895_v0 = vmov 0   ;;  %s2427_s1 = inlined_call_operand.vmem [shape: bf16[256,128], index: 1, kind: input, shape index: {}]   ;;  %s2428_s0 = inlined_call_operand.vmem [shape: bf16[512,256], index: 0, kind: input, shape index: {}]   ;;  %s2429_s2 = inlined_call_operand.vmem [shape: f32[1,128], index: 2, kind: input, shape index: {}]   ;;  %s2430_s3 = inlined_call_operand.vmem [shape: f32[1,128], index: 3, kind: input, shape index: {}]   ;;  %s2431_s4 = inlined_call_operand.vmem [shape: bf16[512,128], index: 4, kind: output, shape index: {}]  }
   0x1   :  { %530 = vmatprep.subr.bf16.mxu0 %v1895_v0  ;;  %1750 = vmatprep.subr.bf16.mxu1 %v1895_v0  ;;  %v1783_v1 = vld [vmem:[%s2427_s1 + $0x38] sm:$0xff]   ;;  %v1784_v2 = vld [vmem:[%s2427_s1 + $0x30] sm:$0xff]   ;;  %v1785_v3 = vld [vmem:[%s2427_s1 + $0x28] sm:$0xff]  }
   0x2   :  { %531 = vmatpush1.bf16.msra.mxu0 %v1783_v1  ;;  %1766 = vmatpush1.bf16.msra.mxu1 %v1783_v1  ;;  %v1786_v4 = vld [vmem:[%s2427_s1 + $0x20] sm:$0xff]   ;;  %v1787_v5 = vld [vmem:[%s2427_s1 + $0x18] sm:$0xff]   ;;  %v1788_v7 = vld [vmem:[%s2427_s1 + $0x10] sm:$0xff]  }
   0x3   :  { %532 = vmatprep.subr.bf16.mxu0 %v1895_v0  ;;  %1751 = vmatprep.subr.bf16.mxu1 %v1895_v0  ;;  %v1801_v6 = vld [vmem:[%s2428_s0 + $0x4] ss:$8 sps:$4 sm:$0xff]   ;;  %v1791_v11 = vld [vmem:[%s2427_s1 + $0x78] sm:$0xff]   ;;  %v1792_v12 = vld [vmem:[%s2427_s1 + $0x70] sm:$0xff]  }
   0x4   :  { %v1804_v8 = vld [vmem:[%s2428_s0 + $0x104] ss:$8 sps:$4 sm:$0xff]   ;;  %562 = vmatprep.mubr.bf16.mxu0 %v1801_v6  ;;  %v1795_v15 = vld [vmem:[%s2427_s1 + $0x58] sm:$0xff]   ;;  %v1796_v16 = vld [vmem:[%s2427_s1 + $0x50] sm:$0xff]  }
   0x5   :  { %690 = vmatprep.mubr.bf16.mxu1 %v1804_v8  ;;  %v1789_v9 = vld [vmem:[%s2427_s1 + $0x8] sm:$0xff]   ;;  %v1790_v10 = vld [vmem:[%s2427_s1] sm:$0xff]   ;;  %v1805_v21 = vld [vmem:[%s2428_s0 + $0x14] ss:$8 sps:$4 sm:$0xff]  }
   0x6   :  { %533 = vmatpush1.bf16.msra.mxu0 %v1784_v2  ;;  %1767 = vmatpush1.bf16.msra.mxu1 %v1784_v2  ;;  %v1793_v13 = vld [vmem:[%s2427_s1 + $0x68] sm:$0xff]   ;;  %v1794_v14 = vld [vmem:[%s2427_s1 + $0x60] sm:$0xff]   ;;  %v1807_v22 = vld [vmem:[%s2428_s0 + $0x114] ss:$8 sps:$4 sm:$0xff]  }
   0x7   :  { %534 = vmatprep.subr.bf16.mxu0 %v1895_v0  ;;  %1752 = vmatprep.subr.bf16.mxu1 %v1895_v0  ;;  %v1797_v17 = vld [vmem:[%s2427_s1 + $0x48] sm:$0xff]   ;;  %v1798_v18 = vld [vmem:[%s2427_s1 + $0x40] sm:$0xff]   ;;  %v1809_v23 = vld [vmem:[%s2428_s0 + $0x10] ss:$8 sps:$4 sm:$0xff]  }
   0x8   :  { %v1799_v19 = vld [vmem:[%s2428_s0] ss:$8 sps:$4 sm:$0xff]   ;;  %v1810_v24 = vld [vmem:[%s2428_s0 + $0x110] ss:$8 sps:$4 sm:$0xff]   ;;  %v1811_v25 = vld [vmem:[%s2428_s0 + $0x24] ss:$8 sps:$4 sm:$0xff]  }
   0x9   :  { %v1802_v20 = vld [vmem:[%s2428_s0 + $0x100] ss:$8 sps:$4 sm:$0xff]   ;;  %v1813_v26 = vld [vmem:[%s2428_s0 + $0x124] ss:$8 sps:$4 sm:$0xff]   ;;  %v1817_v29 = vld [vmem:[%s2428_s0 + $0x34] ss:$8 sps:$4 sm:$0xff]  }
   0xa   :  { %535 = vmatpush1.bf16.msra.mxu0 %v1785_v3  ;;  %1768 = vmatpush1.bf16.msra.mxu1 %v1785_v3  ;;  %v1815_v27 = vld [vmem:[%s2428_s0 + $0x20] ss:$8 sps:$4 sm:$0xff]   ;;  %v1819_v30 = vld [vmem:[%s2428_s0 + $0x134] ss:$8 sps:$4 sm:$0xff]   ;;  %v1821_v31 = vld [vmem:[%s2428_s0 + $0x30] ss:$8 sps:$4 sm:$0xff]  }
   0xb   :  { %536 = vmatprep.subr.bf16.mxu0 %v1895_v0  ;;  %1753 = vmatprep.subr.bf16.mxu1 %v1895_v0  ;;  %v1816_v28 = vld [vmem:[%s2428_s0 + $0x120] ss:$8 sps:$4 sm:$0xff]   ;;  %v1822_v32 = vld [vmem:[%s2428_s0 + $0x130] ss:$8 sps:$4 sm:$0xff]   ;;  %v1823_v33 = vld [vmem:[%s2428_s0 + $0x44] ss:$8 sps:$4 sm:$0xff]  }
   0xc   :  { %v1825_v34 = vld [vmem:[%s2428_s0 + $0x144] ss:$8 sps:$4 sm:$0xff]   ;;  %v1827_v35 = vld [vmem:[%s2428_s0 + $0x40] ss:$8 sps:$4 sm:$0xff]   ;;  %v1829_v37 = vld [vmem:[%s2428_s0 + $0x54] ss:$8 sps:$4 sm:$0xff]  }
   0xd   :  { %v1828_v36 = vld [vmem:[%s2428_s0 + $0x140] ss:$8 sps:$4 sm:$0xff]   ;;  %v1831_v38 = vld [vmem:[%s2428_s0 + $0x154] ss:$8 sps:$4 sm:$0xff]   ;;  %v1833_v39 = vld [vmem:[%s2428_s0 + $0x50] ss:$8 sps:$4 sm:$0xff]  }
   0xe   :  { %537 = vmatpush1.bf16.msra.mxu0 %v1786_v4  ;;  %1769 = vmatpush1.bf16.msra.mxu1 %v1786_v4  ;;  %v1834_v40 = vld [vmem:[%s2428_s0 + $0x150] ss:$8 sps:$4 sm:$0xff]   ;;  %v1835_v41 = vld [vmem:[%s2428_s0 + $0x64] ss:$8 sps:$4 sm:$0xff]   ;;  %v1839_v43 = vld [vmem:[%s2428_s0 + $0x60] ss:$8 sps:$4 sm:$0xff]  }
   0xf   :  { %538 = vmatprep.subr.bf16.mxu0 %v1895_v0  ;;  %1754 = vmatprep.subr.bf16.mxu1 %v1895_v0  ;;  %v1837_v42 = vld [vmem:[%s2428_s0 + $0x164] ss:$8 sps:$4 sm:$0xff]   ;;  %v1840_v44 = vld [vmem:[%s2428_s0 + $0x160] ss:$8 sps:$4 sm:$0xff]   ;;  %v1841_v45 = vld [vmem:[%s2428_s0 + $0x74] ss:$8 sps:$4 sm:$0xff]  }
  0x10   :  { %v1843_v46 = vld [vmem:[%s2428_s0 + $0x174] ss:$8 sps:$4 sm:$0xff]   ;;  %v1845_v47 = vld [vmem:[%s2428_s0 + $0x70] ss:$8 sps:$4 sm:$0xff]   ;;  %v1847_v49 = vld [vmem:[%s2428_s0 + $0x84] ss:$8 sps:$4 sm:$0xff]  }
  0x11   :  { %v1846_v48 = vld [vmem:[%s2428_s0 + $0x170] ss:$8 sps:$4 sm:$0xff]   ;;  %v1849_v50 = vld [vmem:[%s2428_s0 + $0x184] ss:$8 sps:$4 sm:$0xff]   ;;  %v1851_v51 = vld [vmem:[%s2428_s0 + $0x80] ss:$8 sps:$4 sm:$0xff]  }
  0x12   :  { %539 = vmatpush1.bf16.msra.mxu0 %v1787_v5  ;;  %1770 = vmatpush1.bf16.msra.mxu1 %v1787_v5  ;;  %v1852_v52 = vld [vmem:[%s2428_s0 + $0x180] ss:$8 sps:$4 sm:$0xff]   ;;  %v1853_v53 = vld [vmem:[%s2428_s0 + $0x94] ss:$8 sps:$4 sm:$0xff]   ;;  %v1857_v55 = vld [vmem:[%s2428_s0 + $0x90] ss:$8 sps:$4 sm:$0xff]  }
  0x13   :  { %540 = vmatprep.subr.bf16.mxu0 %v1895_v0  ;;  %1755 = vmatprep.subr.bf16.mxu1 %v1895_v0  ;;  %v1855_v54 = vld [vmem:[%s2428_s0 + $0x194] ss:$8 sps:$4 sm:$0xff]   ;;  %v1858_v56 = vld [vmem:[%s2428_s0 + $0x190] ss:$8 sps:$4 sm:$0xff]   ;;  %v1859_v57 = vld [vmem:[%s2428_s0 + $0xa4] ss:$8 sps:$4 sm:$0xff]  }
  0x14   :  { %v1861_v58 = vld [vmem:[%s2428_s0 + $0x1a4] ss:$8 sps:$4 sm:$0xff]   ;;  %v1863_v59 = vld [vmem:[%s2428_s0 + $0xa0] ss:$8 sps:$4 sm:$0xff]   ;;  %v1865_v61 = vld [vmem:[%s2428_s0 + $0xb4] ss:$8 sps:$4 sm:$0xff]  }
  0x15   :  { %v1864_v60 = vld [vmem:[%s2428_s0 + $0x1a0] ss:$8 sps:$4 sm:$0xff]   ;;  %v1867_v62 = vld [vmem:[%s2428_s0 + $0x1b4] ss:$8 sps:$4 sm:$0xff]   ;;  %v1869_v63 = vld [vmem:[%s2428_s0 + $0xb0] ss:$8 sps:$4 sm:$0xff]  }
  0x16   :  { %541 = vmatpush1.bf16.msra.mxu0 %v1788_v7  ;;  %1771 = vmatpush1.bf16.msra.mxu1 %v1788_v7  ;;  %v1871_v1 = vld [vmem:[%s2428_s0 + $0xc4] ss:$8 sps:$4 sm:$0xff]   ;;  %v1875_v3 = vld [vmem:[%s2428_s0 + $0xc0] ss:$8 sps:$4 sm:$0xff]   ;;  %v1877_v5 = vld [vmem:[%s2428_s0 + $0xd4] ss:$8 sps:$4 sm:$0xff]  }
  0x17   :  { %542 = vmatprep.subr.bf16.mxu0 %v1895_v0  ;;  %1756 = vmatprep.subr.bf16.mxu1 %v1895_v0  ;;  %v1873_v2 = vld [vmem:[%s2428_s0 + $0x1c4] ss:$8 sps:$4 sm:$0xff]   ;;  %v1876_v4 = vld [vmem:[%s2428_s0 + $0x1c0] ss:$8 sps:$4 sm:$0xff]   ;;  %v1879_v6 = vld [vmem:[%s2428_s0 + $0x1d4] ss:$8 sps:$4 sm:$0xff]  }
  0x18   :  { %v1881_v7 = vld [vmem:[%s2428_s0 + $0xd0] ss:$8 sps:$4 sm:$0xff]  }
  0x19   :  { %v1882_v8 = vld [vmem:[%s2428_s0 + $0x1d0] ss:$8 sps:$4 sm:$0xff]  }
  0x1a   :  { %543 = vmatpush1.bf16.msra.mxu0 %v1789_v9  ;;  %1772 = vmatpush1.bf16.msra.mxu1 %v1789_v9  ;;  %v1883_v9 = vld [vmem:[%s2428_s0 + $0xe4] ss:$8 sps:$4 sm:$0xff]  }
  0x1b   :  { %544 = vmatprep.subr.bf16.mxu0 %v1895_v0  ;;  %1757 = vmatprep.subr.bf16.mxu1 %v1895_v0 }
  0x1e   :  { %545 = vmatpush1.bf16.msra.mxu0 %v1790_v10  ;;  %1773 = vmatpush1.bf16.msra.mxu1 %v1790_v10  ;;  %v1885_v10 = vld [vmem:[%s2428_s0 + $0x1e4] ss:$8 sps:$4 sm:$0xff]  }
  0x1f   :  { %546 = vmatprep.subr.bf16.mxu0 %v1895_v0  ;;  %1758 = vmatprep.subr.bf16.mxu1 %v1895_v0 }
  0x22   :  { %547 = vmatpush2.bf16.msra.mxu0 %v1791_v11  ;;  %1774 = vmatpush2.bf16.msra.mxu1 %v1791_v11  ;;  %v1887_v11 = vld [vmem:[%s2428_s0 + $0xe0] ss:$8 sps:$4 sm:$0xff]  }
  0x23   :  { %548 = vmatprep.subr.bf16.mxu0 %v1895_v0  ;;  %1759 = vmatprep.subr.bf16.mxu1 %v1895_v0 }
  0x26   :  { %549 = vmatpush2.bf16.msra.mxu0 %v1792_v12  ;;  %1775 = vmatpush2.bf16.msra.mxu1 %v1792_v12  ;;  %v1888_v12 = vld [vmem:[%s2428_s0 + $0x1e0] ss:$8 sps:$4 sm:$0xff]  }
  0x27   :  { %550 = vmatprep.subr.bf16.mxu0 %v1895_v0  ;;  %1760 = vmatprep.subr.bf16.mxu1 %v1895_v0 }
  0x2a   :  { %551 = vmatpush2.bf16.msra.mxu0 %v1793_v13  ;;  %1776 = vmatpush2.bf16.msra.mxu1 %v1793_v13  ;;  %v1889_v13 = vld [vmem:[%s2428_s0 + $0xf4] ss:$8 sps:$4 sm:$0xff]  }
  0x2b   :  { %552 = vmatprep.subr.bf16.mxu0 %v1895_v0  ;;  %1761 = vmatprep.subr.bf16.mxu1 %v1895_v0 }
  0x2e   :  { %553 = vmatpush2.bf16.msra.mxu0 %v1794_v14  ;;  %1777 = vmatpush2.bf16.msra.mxu1 %v1794_v14  ;;  %v1891_v14 = vld [vmem:[%s2428_s0 + $0x1f4] ss:$8 sps:$4 sm:$0xff]  }
  0x2f   :  { %554 = vmatprep.subr.bf16.mxu0 %v1895_v0  ;;  %1762 = vmatprep.subr.bf16.mxu1 %v1895_v0 }
  0x32   :  { %555 = vmatpush2.bf16.msra.mxu0 %v1795_v15  ;;  %1778 = vmatpush2.bf16.msra.mxu1 %v1795_v15  ;;  %v1893_v15 = vld [vmem:[%s2428_s0 + $0xf0] ss:$8 sps:$4 sm:$0xff]  }
  0x33   :  { %556 = vmatprep.subr.bf16.mxu0 %v1895_v0  ;;  %1763 = vmatprep.subr.bf16.mxu1 %v1895_v0 }
  0x36   :  { %557 = vmatpush2.bf16.msra.mxu0 %v1796_v16  ;;  %1779 = vmatpush2.bf16.msra.mxu1 %v1796_v16  ;;  %v1894_v16 = vld [vmem:[%s2428_s0 + $0x1f0] ss:$8 sps:$4 sm:$0xff]  }
  0x37   :  { %558 = vmatprep.subr.bf16.mxu0 %v1895_v0  ;;  %1764 = vmatprep.subr.bf16.mxu1 %v1895_v0 }
  0x3a   :  { %559 = vmatpush2.bf16.msra.mxu0 %v1797_v17  ;;  %1780 = vmatpush2.bf16.msra.mxu1 %v1797_v17  ;;  %v2196_v17 = vld [vmem:[%s2429_s2] ss:$0 sm:$0xff] }
  0x3b   :  { %560 = vmatprep.subr.bf16.mxu0 %v1895_v0  ;;  %1765 = vmatprep.subr.bf16.mxu1 %v1895_v0  ;;  %v1870_v0 = vld [vmem:[%s2428_s0 + $0x1b0] ss:$8 sps:$4 sm:$0xff]  }
  0x3e   :  { %561 = vmatpush2.bf16.msra.mxu0 %v1798_v18  ;;  %1781 = vmatpush2.bf16.msra.mxu1 %v1798_v18 }
  0x41   :  { %563 = vmatmul.mubr.bf16.vlgmr.msra.gmra.mxu0 %v1799_v19  ;;  %691 = vmatmul.mubr.bf16.vlgmr.msra.gmra.mxu1 %v1802_v20 }
  0x42   :  { %570 = vmatprep.mubr.bf16.mxu0 %v1805_v21  ;;  %698 = vmatprep.mubr.bf16.mxu1 %v1807_v22  ;;  %v2202_v21 = vld [vmem:[%s2430_s3] ss:$0 sm:$0xff] }
  0x49   :  { %571 = vmatmul.mubr.bf16.gmra.mxu0 %v1809_v23  ;;  %699 = vmatmul.mubr.bf16.gmra.mxu1 %v1810_v24 }
  0x4a   :  { %578 = vmatprep.mubr.bf16.mxu0 %v1811_v25  ;;  %706 = vmatprep.mubr.bf16.mxu1 %v1813_v26 }
  0x51   :  { %579 = vmatmul.mubr.bf16.gmra.mxu0 %v1815_v27  ;;  %707 = vmatmul.mubr.bf16.gmra.mxu1 %v1816_v28 }
  0x52   :  { %586 = vmatprep.mubr.bf16.mxu0 %v1817_v29  ;;  %714 = vmatprep.mubr.bf16.mxu1 %v1819_v30 }
  0x59   :  { %587 = vmatmul.mubr.bf16.gmra.mxu0 %v1821_v31  ;;  %715 = vmatmul.mubr.bf16.gmra.mxu1 %v1822_v32 }
  0x5a   :  { %594 = vmatprep.mubr.bf16.mxu0 %v1823_v33  ;;  %722 = vmatprep.mubr.bf16.mxu1 %v1825_v34 }
  0x61   :  { %595 = vmatmul.mubr.bf16.gmra.mxu0 %v1827_v35  ;;  %723 = vmatmul.mubr.bf16.gmra.mxu1 %v1828_v36 }
  0x62   :  { %602 = vmatprep.mubr.bf16.mxu0 %v1829_v37  ;;  %730 = vmatprep.mubr.bf16.mxu1 %v1831_v38 }
  0x69   :  { %603 = vmatmul.mubr.bf16.gmra.mxu0 %v1833_v39  ;;  %731 = vmatmul.mubr.bf16.gmra.mxu1 %v1834_v40 }
  0x6a   :  { %610 = vmatprep.mubr.bf16.mxu0 %v1835_v41  ;;  %738 = vmatprep.mubr.bf16.mxu1 %v1837_v42 }
  0x71   :  { %611 = vmatmul.mubr.bf16.gmra.mxu0 %v1839_v43  ;;  %739 = vmatmul.mubr.bf16.gmra.mxu1 %v1840_v44 }
  0x72   :  { %618 = vmatprep.mubr.bf16.mxu0 %v1841_v45  ;;  %746 = vmatprep.mubr.bf16.mxu1 %v1843_v46 }
  0x79   :  { %619 = vmatmul.mubr.bf16.gmra.mxu0 %v1845_v47  ;;  %747 = vmatmul.mubr.bf16.gmra.mxu1 %v1846_v48 }
  0x7a   :  { %626 = vmatprep.mubr.bf16.mxu0 %v1847_v49  ;;  %754 = vmatprep.mubr.bf16.mxu1 %v1849_v50 }
  0x81   :  { %627 = vmatmul.mubr.bf16.gmra.mxu0 %v1851_v51  ;;  %755 = vmatmul.mubr.bf16.gmra.mxu1 %v1852_v52 }
  0x82   :  { %634 = vmatprep.mubr.bf16.mxu0 %v1853_v53  ;;  %762 = vmatprep.mubr.bf16.mxu1 %v1855_v54 }
  0x89   :  { %635 = vmatmul.mubr.bf16.gmra.mxu0 %v1857_v55  ;;  %763 = vmatmul.mubr.bf16.gmra.mxu1 %v1858_v56 }
  0x8a   :  { %642 = vmatprep.mubr.bf16.mxu0 %v1859_v57  ;;  %770 = vmatprep.mubr.bf16.mxu1 %v1861_v58 }
  0x91   :  { %643 = vmatmul.mubr.bf16.gmra.mxu0 %v1863_v59  ;;  %771 = vmatmul.mubr.bf16.gmra.mxu1 %v1864_v60 }
  0x92   :  { %650 = vmatprep.mubr.bf16.mxu0 %v1865_v61  ;;  %778 = vmatprep.mubr.bf16.mxu1 %v1867_v62 }
  0x99   :  { %651 = vmatmul.mubr.bf16.gmra.mxu0 %v1869_v63  ;;  %779 = vmatmul.mubr.bf16.gmra.mxu1 %v1870_v0 }
  0x9a   :  { %658 = vmatprep.mubr.bf16.mxu0 %v1871_v1  ;;  %786 = vmatprep.mubr.bf16.mxu1 %v1873_v2 }
  0xa1   :  { %659 = vmatmul.mubr.bf16.gmra.mxu0 %v1875_v3  ;;  %787 = vmatmul.mubr.bf16.gmra.mxu1 %v1876_v4 }
  0xa2   :  { %666 = vmatprep.mubr.bf16.mxu0 %v1877_v5  ;;  %794 = vmatprep.mubr.bf16.mxu1 %v1879_v6 }
  0xa9   :  { %667 = vmatmul.mubr.bf16.gmra.mxu0 %v1881_v7  ;;  %795 = vmatmul.mubr.bf16.gmra.mxu1 %v1882_v8 }
  0xaa   :  { %674 = vmatprep.mubr.bf16.mxu0 %v1883_v9  ;;  %802 = vmatprep.mubr.bf16.mxu1 %v1885_v10 }
  0xb1   :  { %675 = vmatmul.mubr.bf16.gmra.mxu0 %v1887_v11  ;;  %803 = vmatmul.mubr.bf16.gmra.mxu1 %v1888_v12 }
  0xb2   :  { %682 = vmatprep.mubr.bf16.mxu0 %v1889_v13  ;;  %810 = vmatprep.mubr.bf16.mxu1 %v1891_v14 }
  0xb9   :  { %683 = vmatmul.mubr.bf16.gmra.mxu0 %v1893_v15  ;;  %811 = vmatmul.mubr.bf16.gmra.mxu1 %v1894_v16 }
 0x101   :  { %v564_v18 = vpop.f32.mrf.mxu0  ;;  %v692_v19 = vpop.f32.mrf.mxu1 }
 0x102   :  { %v826_v20 = vmul.f32 %v2196_v17, %v564_v18  ;;  %v858_v22 = vmul.f32 %v2196_v17, %v692_v19 }
 0x103   :  { %v566_v23 = vpop.f32.mrf.mxu0  ;;  %v694_v24 = vpop.f32.mrf.mxu1 }
 0x104   :  { %v897_v25 = vadd.f32 %v2202_v21, %v826_v20  ;;  %v929_v26 = vadd.f32 %v2202_v21, %v858_v22 }
 0x105   :  { %v567_v27 = vpop.f32.mrf.mxu0  ;;  %v695_v28 = vpop.f32.mrf.mxu1 }
 0x106   :  { %v827_v29 = vmul.f32 %v2196_v17, %v567_v27  ;;  %v859_v30 = vmul.f32 %v2196_v17, %v695_v28  ;;  %v961_v35 = vmax.f32 %v897_v25, 0.0  ;;  %v993_v36 = vmax.f32 %v929_v26, 0.0 }
 0x107   :  { %v569_v31 = vpop.f32.mrf.mxu0  ;;  %v697_v32 = vpop.f32.mrf.mxu1 }
 0x108   :  { %v898_v33 = vadd.f32 %v2202_v21, %v827_v29  ;;  %v930_v34 = vadd.f32 %v2202_v21, %v859_v30 }
 0x109   :  { %v572_v37 = vpop.f32.mrf.mxu0  ;;  %v700_v38 = vpop.f32.mrf.mxu1 }
 0x10a   :  { %v962_v39 = vmax.f32 %v898_v33, 0.0  ;;  %v994_v40 = vmax.f32 %v930_v34, 0.0  ;;  %v828_v41 = vmul.f32 %v2196_v17, %v572_v37  ;;  %v860_v42 = vmul.f32 %v2196_v17, %v700_v38 }
 0x10b   :  { %v574_v43 = vpop.f32.mrf.mxu0  ;;  %v702_v44 = vpop.f32.mrf.mxu1 }
 0x10c   :  { %v1562_v45 = vpack.c.bf16 %v962_v39, %v961_v35  ;;  %v1642_v46 = vpack.c.bf16 %v994_v40, %v993_v36  ;;  %v899_v47 = vadd.f32 %v2202_v21, %v828_v41  ;;  %v931_v48 = vadd.f32 %v2202_v21, %v860_v42 }
 0x10d   :  { %v575_v49 = vpop.f32.mrf.mxu0  ;;  %v703_v50 = vpop.f32.mrf.mxu1 }
 0x10e   :  { %1563 = vst [vmem:[%s2431_s4] sm:$0xff] %v1562_v45   ;;  %1734 = vst [vmem:[%s2431_s4 + $0x80] sm:$0xff] %v1642_v46   ;;  %v829_v51 = vmul.f32 %v2196_v17, %v575_v49  ;;  %v861_v52 = vmul.f32 %v2196_v17, %v703_v50  ;;  %v963_v57 = vmax.f32 %v899_v47, 0.0  ;;  %v995_v58 = vmax.f32 %v931_v48, 0.0 }
 0x10f   :  { %v577_v53 = vpop.f32.mrf.mxu0  ;;  %v705_v54 = vpop.f32.mrf.mxu1 }
 0x110   :  { %v900_v55 = vadd.f32 %v2202_v21, %v829_v51  ;;  %v932_v56 = vadd.f32 %v2202_v21, %v861_v52 }
 0x111   :  { %v580_v59 = vpop.f32.mrf.mxu0  ;;  %v708_v60 = vpop.f32.mrf.mxu1 }
 0x112   :  { %v964_v61 = vmax.f32 %v900_v55, 0.0  ;;  %v996_v62 = vmax.f32 %v932_v56, 0.0  ;;  %v830_v63 = vmul.f32 %v2196_v17, %v580_v59  ;;  %v862_v0 = vmul.f32 %v2196_v17, %v708_v60 }
 0x113   :  { %v582_v1 = vpop.f32.mrf.mxu0  ;;  %v710_v2 = vpop.f32.mrf.mxu1 }
 0x114   :  { %v1567_v3 = vpack.c.bf16 %v964_v61, %v963_v57  ;;  %v1647_v4 = vpack.c.bf16 %v996_v62, %v995_v58  ;;  %v901_v5 = vadd.f32 %v2202_v21, %v830_v63  ;;  %v933_v6 = vadd.f32 %v2202_v21, %v862_v0 }
 0x115   :  { %v583_v7 = vpop.f32.mrf.mxu0  ;;  %v711_v8 = vpop.f32.mrf.mxu1 }
 0x116   :  { %1719 = vst [vmem:[%s2431_s4 + $0x8] sm:$0xff] %v1567_v3   ;;  %1735 = vst [vmem:[%s2431_s4 + $0x88] sm:$0xff] %v1647_v4   ;;  %v831_v9 = vmul.f32 %v2196_v17, %v583_v7  ;;  %v863_v10 = vmul.f32 %v2196_v17, %v711_v8  ;;  %v965_v15 = vmax.f32 %v901_v5, 0.0  ;;  %v997_v16 = vmax.f32 %v933_v6, 0.0 }
 0x117   :  { %v585_v11 = vpop.f32.mrf.mxu0  ;;  %v713_v12 = vpop.f32.mrf.mxu1 }
 0x118   :  { %v902_v13 = vadd.f32 %v2202_v21, %v831_v9  ;;  %v934_v14 = vadd.f32 %v2202_v21, %v863_v10 }
 0x119   :  { %v588_v18 = vpop.f32.mrf.mxu0  ;;  %v716_v19 = vpop.f32.mrf.mxu1 }
 0x11a   :  { %v966_v20 = vmax.f32 %v902_v13, 0.0  ;;  %v998_v22 = vmax.f32 %v934_v14, 0.0  ;;  %v832_v23 = vmul.f32 %v2196_v17, %v588_v18  ;;  %v864_v24 = vmul.f32 %v2196_v17, %v716_v19 }
 0x11b   :  { %v590_v25 = vpop.f32.mrf.mxu0  ;;  %v718_v26 = vpop.f32.mrf.mxu1 }
 0x11c   :  { %v1572_v27 = vpack.c.bf16 %v966_v20, %v965_v15  ;;  %v1652_v28 = vpack.c.bf16 %v998_v22, %v997_v16  ;;  %v903_v29 = vadd.f32 %v2202_v21, %v832_v23  ;;  %v935_v30 = vadd.f32 %v2202_v21, %v864_v24 }
 0x11d   :  { %v591_v31 = vpop.f32.mrf.mxu0  ;;  %v719_v32 = vpop.f32.mrf.mxu1 }
 0x11e   :  { %1720 = vst [vmem:[%s2431_s4 + $0x10] sm:$0xff] %v1572_v27   ;;  %1736 = vst [vmem:[%s2431_s4 + $0x90] sm:$0xff] %v1652_v28   ;;  %v833_v33 = vmul.f32 %v2196_v17, %v591_v31  ;;  %v865_v34 = vmul.f32 %v2196_v17, %v719_v32  ;;  %v967_v39 = vmax.f32 %v903_v29, 0.0  ;;  %v999_v40 = vmax.f32 %v935_v30, 0.0 }
 0x11f   :  { %v593_v35 = vpop.f32.mrf.mxu0  ;;  %v721_v36 = vpop.f32.mrf.mxu1 }
 0x120   :  { %v904_v37 = vadd.f32 %v2202_v21, %v833_v33  ;;  %v936_v38 = vadd.f32 %v2202_v21, %v865_v34 }
 0x121   :  { %v596_v41 = vpop.f32.mrf.mxu0  ;;  %v724_v42 = vpop.f32.mrf.mxu1 }
 0x122   :  { %v968_v43 = vmax.f32 %v904_v37, 0.0  ;;  %v1000_v44 = vmax.f32 %v936_v38, 0.0  ;;  %v834_v45 = vmul.f32 %v2196_v17, %v596_v41  ;;  %v866_v46 = vmul.f32 %v2196_v17, %v724_v42 }
 0x123   :  { %v598_v47 = vpop.f32.mrf.mxu0  ;;  %v726_v48 = vpop.f32.mrf.mxu1 }
 0x124   :  { %v1577_v49 = vpack.c.bf16 %v968_v43, %v967_v39  ;;  %v1657_v50 = vpack.c.bf16 %v1000_v44, %v999_v40  ;;  %v905_v51 = vadd.f32 %v2202_v21, %v834_v45  ;;  %v937_v52 = vadd.f32 %v2202_v21, %v866_v46 }
 0x125   :  { %v599_v53 = vpop.f32.mrf.mxu0  ;;  %v727_v54 = vpop.f32.mrf.mxu1 }
 0x126   :  { %1721 = vst [vmem:[%s2431_s4 + $0x18] sm:$0xff] %v1577_v49   ;;  %1737 = vst [vmem:[%s2431_s4 + $0x98] sm:$0xff] %v1657_v50   ;;  %v835_v55 = vmul.f32 %v2196_v17, %v599_v53  ;;  %v867_v56 = vmul.f32 %v2196_v17, %v727_v54  ;;  %v969_v61 = vmax.f32 %v905_v51, 0.0  ;;  %v1001_v62 = vmax.f32 %v937_v52, 0.0 }
 0x127   :  { %v601_v57 = vpop.f32.mrf.mxu0  ;;  %v729_v58 = vpop.f32.mrf.mxu1 }
 0x128   :  { %v906_v59 = vadd.f32 %v2202_v21, %v835_v55  ;;  %v938_v60 = vadd.f32 %v2202_v21, %v867_v56 }
 0x129   :  { %v604_v63 = vpop.f32.mrf.mxu0  ;;  %v732_v0 = vpop.f32.mrf.mxu1 }
 0x12a   :  { %v970_v1 = vmax.f32 %v906_v59, 0.0  ;;  %v1002_v2 = vmax.f32 %v938_v60, 0.0  ;;  %v836_v3 = vmul.f32 %v2196_v17, %v604_v63  ;;  %v868_v4 = vmul.f32 %v2196_v17, %v732_v0 }
 0x12b   :  { %v606_v5 = vpop.f32.mrf.mxu0  ;;  %v734_v6 = vpop.f32.mrf.mxu1 }
 0x12c   :  { %v1582_v7 = vpack.c.bf16 %v970_v1, %v969_v61  ;;  %v1662_v8 = vpack.c.bf16 %v1002_v2, %v1001_v62  ;;  %v907_v9 = vadd.f32 %v2202_v21, %v836_v3  ;;  %v939_v10 = vadd.f32 %v2202_v21, %v868_v4 }
 0x12d   :  { %v607_v11 = vpop.f32.mrf.mxu0  ;;  %v735_v12 = vpop.f32.mrf.mxu1 }
 0x12e   :  { %1722 = vst [vmem:[%s2431_s4 + $0x20] sm:$0xff] %v1582_v7   ;;  %1738 = vst [vmem:[%s2431_s4 + $0xa0] sm:$0xff] %v1662_v8   ;;  %v837_v13 = vmul.f32 %v2196_v17, %v607_v11  ;;  %v869_v14 = vmul.f32 %v2196_v17, %v735_v12  ;;  %v971_v20 = vmax.f32 %v907_v9, 0.0  ;;  %v1003_v22 = vmax.f32 %v939_v10, 0.0 }
 0x12f   :  { %v609_v15 = vpop.f32.mrf.mxu0  ;;  %v737_v16 = vpop.f32.mrf.mxu1 }
 0x130   :  { %v908_v18 = vadd.f32 %v2202_v21, %v837_v13  ;;  %v940_v19 = vadd.f32 %v2202_v21, %v869_v14 }
 0x131   :  { %v612_v23 = vpop.f32.mrf.mxu0  ;;  %v740_v24 = vpop.f32.mrf.mxu1 }
 0x132   :  { %v972_v25 = vmax.f32 %v908_v18, 0.0  ;;  %v1004_v26 = vmax.f32 %v940_v19, 0.0  ;;  %v838_v27 = vmul.f32 %v2196_v17, %v612_v23  ;;  %v870_v28 = vmul.f32 %v2196_v17, %v740_v24 }
 0x133   :  { %v614_v29 = vpop.f32.mrf.mxu0  ;;  %v742_v30 = vpop.f32.mrf.mxu1 }
 0x134   :  { %v1587_v31 = vpack.c.bf16 %v972_v25, %v971_v20  ;;  %v1667_v32 = vpack.c.bf16 %v1004_v26, %v1003_v22  ;;  %v909_v33 = vadd.f32 %v2202_v21, %v838_v27  ;;  %v941_v34 = vadd.f32 %v2202_v21, %v870_v28 }
 0x135   :  { %v615_v35 = vpop.f32.mrf.mxu0  ;;  %v743_v36 = vpop.f32.mrf.mxu1 }
 0x136   :  { %1723 = vst [vmem:[%s2431_s4 + $0x28] sm:$0xff] %v1587_v31   ;;  %1739 = vst [vmem:[%s2431_s4 + $0xa8] sm:$0xff] %v1667_v32   ;;  %v839_v37 = vmul.f32 %v2196_v17, %v615_v35  ;;  %v871_v38 = vmul.f32 %v2196_v17, %v743_v36  ;;  %v973_v43 = vmax.f32 %v909_v33, 0.0  ;;  %v1005_v44 = vmax.f32 %v941_v34, 0.0 }
 0x137   :  { %v617_v39 = vpop.f32.mrf.mxu0  ;;  %v745_v40 = vpop.f32.mrf.mxu1 }
 0x138   :  { %v910_v41 = vadd.f32 %v2202_v21, %v839_v37  ;;  %v942_v42 = vadd.f32 %v2202_v21, %v871_v38 }
 0x139   :  { %v620_v45 = vpop.f32.mrf.mxu0  ;;  %v748_v46 = vpop.f32.mrf.mxu1 }
 0x13a   :  { %v974_v47 = vmax.f32 %v910_v41, 0.0  ;;  %v1006_v48 = vmax.f32 %v942_v42, 0.0  ;;  %v840_v49 = vmul.f32 %v2196_v17, %v620_v45  ;;  %v872_v50 = vmul.f32 %v2196_v17, %v748_v46 }
 0x13b   :  { %v622_v51 = vpop.f32.mrf.mxu0  ;;  %v750_v52 = vpop.f32.mrf.mxu1 }
 0x13c   :  { %v1592_v53 = vpack.c.bf16 %v974_v47, %v973_v43  ;;  %v1672_v54 = vpack.c.bf16 %v1006_v48, %v1005_v44  ;;  %v911_v55 = vadd.f32 %v2202_v21, %v840_v49  ;;  %v943_v56 = vadd.f32 %v2202_v21, %v872_v50 }
 0x13d   :  { %v623_v57 = vpop.f32.mrf.mxu0  ;;  %v751_v58 = vpop.f32.mrf.mxu1 }
 0x13e   :  { %1724 = vst [vmem:[%s2431_s4 + $0x30] sm:$0xff] %v1592_v53   ;;  %1740 = vst [vmem:[%s2431_s4 + $0xb0] sm:$0xff] %v1672_v54   ;;  %v841_v59 = vmul.f32 %v2196_v17, %v623_v57  ;;  %v873_v60 = vmul.f32 %v2196_v17, %v751_v58  ;;  %v975_v1 = vmax.f32 %v911_v55, 0.0  ;;  %v1007_v2 = vmax.f32 %v943_v56, 0.0 }
 0x13f   :  { %v625_v61 = vpop.f32.mrf.mxu0  ;;  %v753_v62 = vpop.f32.mrf.mxu1 }
 0x140   :  { %v912_v63 = vadd.f32 %v2202_v21, %v841_v59  ;;  %v944_v0 = vadd.f32 %v2202_v21, %v873_v60 }
 0x141   :  { %v628_v3 = vpop.f32.mrf.mxu0  ;;  %v756_v4 = vpop.f32.mrf.mxu1 }
 0x142   :  { %v976_v5 = vmax.f32 %v912_v63, 0.0  ;;  %v1008_v6 = vmax.f32 %v944_v0, 0.0  ;;  %v842_v7 = vmul.f32 %v2196_v17, %v628_v3  ;;  %v874_v8 = vmul.f32 %v2196_v17, %v756_v4 }
 0x143   :  { %v630_v9 = vpop.f32.mrf.mxu0  ;;  %v758_v10 = vpop.f32.mrf.mxu1 }
 0x144   :  { %v1597_v11 = vpack.c.bf16 %v976_v5, %v975_v1  ;;  %v1677_v12 = vpack.c.bf16 %v1008_v6, %v1007_v2  ;;  %v913_v13 = vadd.f32 %v2202_v21, %v842_v7  ;;  %v945_v14 = vadd.f32 %v2202_v21, %v874_v8 }
 0x145   :  { %v631_v15 = vpop.f32.mrf.mxu0  ;;  %v759_v16 = vpop.f32.mrf.mxu1 }
 0x146   :  { %1725 = vst [vmem:[%s2431_s4 + $0x38] sm:$0xff] %v1597_v11   ;;  %1741 = vst [vmem:[%s2431_s4 + $0xb8] sm:$0xff] %v1677_v12   ;;  %v843_v18 = vmul.f32 %v2196_v17, %v631_v15  ;;  %v875_v19 = vmul.f32 %v2196_v17, %v759_v16  ;;  %v977_v25 = vmax.f32 %v913_v13, 0.0  ;;  %v1009_v26 = vmax.f32 %v945_v14, 0.0 }
 0x147   :  { %v633_v20 = vpop.f32.mrf.mxu0  ;;  %v761_v22 = vpop.f32.mrf.mxu1 }
 0x148   :  { %v914_v23 = vadd.f32 %v2202_v21, %v843_v18  ;;  %v946_v24 = vadd.f32 %v2202_v21, %v875_v19 }
 0x149   :  { %v636_v27 = vpop.f32.mrf.mxu0  ;;  %v764_v28 = vpop.f32.mrf.mxu1 }
 0x14a   :  { %v978_v29 = vmax.f32 %v914_v23, 0.0  ;;  %v1010_v30 = vmax.f32 %v946_v24, 0.0  ;;  %v844_v31 = vmul.f32 %v2196_v17, %v636_v27  ;;  %v876_v32 = vmul.f32 %v2196_v17, %v764_v28 }
 0x14b   :  { %v638_v33 = vpop.f32.mrf.mxu0  ;;  %v766_v34 = vpop.f32.mrf.mxu1 }
 0x14c   :  { %v1602_v35 = vpack.c.bf16 %v978_v29, %v977_v25  ;;  %v1682_v36 = vpack.c.bf16 %v1010_v30, %v1009_v26  ;;  %v915_v37 = vadd.f32 %v2202_v21, %v844_v31  ;;  %v947_v38 = vadd.f32 %v2202_v21, %v876_v32 }
 0x14d   :  { %v639_v39 = vpop.f32.mrf.mxu0  ;;  %v767_v40 = vpop.f32.mrf.mxu1 }
 0x14e   :  { %1726 = vst [vmem:[%s2431_s4 + $0x40] sm:$0xff] %v1602_v35   ;;  %1742 = vst [vmem:[%s2431_s4 + $0xc0] sm:$0xff] %v1682_v36   ;;  %v845_v41 = vmul.f32 %v2196_v17, %v639_v39  ;;  %v877_v42 = vmul.f32 %v2196_v17, %v767_v40  ;;  %v979_v47 = vmax.f32 %v915_v37, 0.0  ;;  %v1011_v48 = vmax.f32 %v947_v38, 0.0 }
 0x14f   :  { %v641_v43 = vpop.f32.mrf.mxu0  ;;  %v769_v44 = vpop.f32.mrf.mxu1 }
 0x150   :  { %v916_v45 = vadd.f32 %v2202_v21, %v845_v41  ;;  %v948_v46 = vadd.f32 %v2202_v21, %v877_v42 }
 0x151   :  { %v644_v49 = vpop.f32.mrf.mxu0  ;;  %v772_v50 = vpop.f32.mrf.mxu1 }
 0x152   :  { %v980_v51 = vmax.f32 %v916_v45, 0.0  ;;  %v1012_v52 = vmax.f32 %v948_v46, 0.0  ;;  %v846_v53 = vmul.f32 %v2196_v17, %v644_v49  ;;  %v878_v54 = vmul.f32 %v2196_v17, %v772_v50 }
 0x153   :  { %v646_v55 = vpop.f32.mrf.mxu0  ;;  %v774_v56 = vpop.f32.mrf.mxu1 }
 0x154   :  { %v1607_v57 = vpack.c.bf16 %v980_v51, %v979_v47  ;;  %v1687_v58 = vpack.c.bf16 %v1012_v52, %v1011_v48  ;;  %v917_v59 = vadd.f32 %v2202_v21, %v846_v53  ;;  %v949_v60 = vadd.f32 %v2202_v21, %v878_v54 }
 0x155   :  { %v647_v61 = vpop.f32.mrf.mxu0  ;;  %v775_v62 = vpop.f32.mrf.mxu1 }
 0x156   :  { %1727 = vst [vmem:[%s2431_s4 + $0x48] sm:$0xff] %v1607_v57   ;;  %1743 = vst [vmem:[%s2431_s4 + $0xc8] sm:$0xff] %v1687_v58   ;;  %v847_v63 = vmul.f32 %v2196_v17, %v647_v61  ;;  %v879_v0 = vmul.f32 %v2196_v17, %v775_v62  ;;  %v981_v5 = vmax.f32 %v917_v59, 0.0  ;;  %v1013_v6 = vmax.f32 %v949_v60, 0.0 }
 0x157   :  { %v649_v1 = vpop.f32.mrf.mxu0  ;;  %v777_v2 = vpop.f32.mrf.mxu1 }
 0x158   :  { %v918_v3 = vadd.f32 %v2202_v21, %v847_v63  ;;  %v950_v4 = vadd.f32 %v2202_v21, %v879_v0 }
 0x159   :  { %v652_v7 = vpop.f32.mrf.mxu0  ;;  %v780_v8 = vpop.f32.mrf.mxu1 }
 0x15a   :  { %v982_v9 = vmax.f32 %v918_v3, 0.0  ;;  %v1014_v10 = vmax.f32 %v950_v4, 0.0  ;;  %v848_v11 = vmul.f32 %v2196_v17, %v652_v7  ;;  %v880_v12 = vmul.f32 %v2196_v17, %v780_v8 }
 0x15b   :  { %v654_v13 = vpop.f32.mrf.mxu0  ;;  %v782_v14 = vpop.f32.mrf.mxu1 }
 0x15c   :  { %v1612_v15 = vpack.c.bf16 %v982_v9, %v981_v5  ;;  %v1692_v16 = vpack.c.bf16 %v1014_v10, %v1013_v6  ;;  %v919_v18 = vadd.f32 %v2202_v21, %v848_v11  ;;  %v951_v19 = vadd.f32 %v2202_v21, %v880_v12 }
 0x15d   :  { %v655_v20 = vpop.f32.mrf.mxu0  ;;  %v783_v22 = vpop.f32.mrf.mxu1 }
 0x15e   :  { %1728 = vst [vmem:[%s2431_s4 + $0x50] sm:$0xff] %v1612_v15   ;;  %1744 = vst [vmem:[%s2431_s4 + $0xd0] sm:$0xff] %v1692_v16   ;;  %v849_v23 = vmul.f32 %v2196_v17, %v655_v20  ;;  %v881_v24 = vmul.f32 %v2196_v17, %v783_v22  ;;  %v983_v29 = vmax.f32 %v919_v18, 0.0  ;;  %v1015_v30 = vmax.f32 %v951_v19, 0.0 }
 0x15f   :  { %v657_v25 = vpop.f32.mrf.mxu0  ;;  %v785_v26 = vpop.f32.mrf.mxu1 }
 0x160   :  { %v920_v27 = vadd.f32 %v2202_v21, %v849_v23  ;;  %v952_v28 = vadd.f32 %v2202_v21, %v881_v24 }
 0x161   :  { %v660_v31 = vpop.f32.mrf.mxu0  ;;  %v788_v32 = vpop.f32.mrf.mxu1 }
 0x162   :  { %v984_v33 = vmax.f32 %v920_v27, 0.0  ;;  %v1016_v34 = vmax.f32 %v952_v28, 0.0  ;;  %v850_v35 = vmul.f32 %v2196_v17, %v660_v31  ;;  %v882_v36 = vmul.f32 %v2196_v17, %v788_v32 }
 0x163   :  { %v662_v37 = vpop.f32.mrf.mxu0  ;;  %v790_v38 = vpop.f32.mrf.mxu1 }
 0x164   :  { %v1617_v39 = vpack.c.bf16 %v984_v33, %v983_v29  ;;  %v1697_v40 = vpack.c.bf16 %v1016_v34, %v1015_v30  ;;  %v921_v41 = vadd.f32 %v2202_v21, %v850_v35  ;;  %v953_v42 = vadd.f32 %v2202_v21, %v882_v36 }
 0x165   :  { %v663_v43 = vpop.f32.mrf.mxu0  ;;  %v791_v44 = vpop.f32.mrf.mxu1 }
 0x166   :  { %1729 = vst [vmem:[%s2431_s4 + $0x58] sm:$0xff] %v1617_v39   ;;  %1745 = vst [vmem:[%s2431_s4 + $0xd8] sm:$0xff] %v1697_v40   ;;  %v851_v45 = vmul.f32 %v2196_v17, %v663_v43  ;;  %v883_v46 = vmul.f32 %v2196_v17, %v791_v44  ;;  %v985_v51 = vmax.f32 %v921_v41, 0.0  ;;  %v1017_v52 = vmax.f32 %v953_v42, 0.0 }
 0x167   :  { %v665_v47 = vpop.f32.mrf.mxu0  ;;  %v793_v48 = vpop.f32.mrf.mxu1 }
 0x168   :  { %v922_v49 = vadd.f32 %v2202_v21, %v851_v45  ;;  %v954_v50 = vadd.f32 %v2202_v21, %v883_v46 }
 0x169   :  { %v668_v53 = vpop.f32.mrf.mxu0  ;;  %v796_v54 = vpop.f32.mrf.mxu1 }
 0x16a   :  { %v986_v55 = vmax.f32 %v922_v49, 0.0  ;;  %v1018_v56 = vmax.f32 %v954_v50, 0.0  ;;  %v852_v57 = vmul.f32 %v2196_v17, %v668_v53  ;;  %v884_v58 = vmul.f32 %v2196_v17, %v796_v54 }
 0x16b   :  { %v670_v59 = vpop.f32.mrf.mxu0  ;;  %v798_v60 = vpop.f32.mrf.mxu1 }
 0x16c   :  { %v1622_v61 = vpack.c.bf16 %v986_v55, %v985_v51  ;;  %v1702_v62 = vpack.c.bf16 %v1018_v56, %v1017_v52  ;;  %v923_v63 = vadd.f32 %v2202_v21, %v852_v57  ;;  %v955_v0 = vadd.f32 %v2202_v21, %v884_v58 }
 0x16d   :  { %v671_v1 = vpop.f32.mrf.mxu0  ;;  %v799_v2 = vpop.f32.mrf.mxu1 }
 0x16e   :  { %1730 = vst [vmem:[%s2431_s4 + $0x60] sm:$0xff] %v1622_v61   ;;  %1746 = vst [vmem:[%s2431_s4 + $0xe0] sm:$0xff] %v1702_v62   ;;  %v853_v3 = vmul.f32 %v2196_v17, %v671_v1  ;;  %v885_v4 = vmul.f32 %v2196_v17, %v799_v2  ;;  %v987_v9 = vmax.f32 %v923_v63, 0.0  ;;  %v1019_v10 = vmax.f32 %v955_v0, 0.0 }
 0x16f   :  { %v673_v5 = vpop.f32.mrf.mxu0  ;;  %v801_v6 = vpop.f32.mrf.mxu1 }
 0x170   :  { %v924_v7 = vadd.f32 %v2202_v21, %v853_v3  ;;  %v956_v8 = vadd.f32 %v2202_v21, %v885_v4 }
 0x171   :  { %v676_v11 = vpop.f32.mrf.mxu0  ;;  %v804_v12 = vpop.f32.mrf.mxu1 }
 0x172   :  { %v988_v13 = vmax.f32 %v924_v7, 0.0  ;;  %v1020_v14 = vmax.f32 %v956_v8, 0.0  ;;  %v854_v15 = vmul.f32 %v2196_v17, %v676_v11  ;;  %v886_v16 = vmul.f32 %v2196_v17, %v804_v12 }
 0x173   :  { %v678_v18 = vpop.f32.mrf.mxu0  ;;  %v806_v19 = vpop.f32.mrf.mxu1 }
 0x174   :  { %v1627_v20 = vpack.c.bf16 %v988_v13, %v987_v9  ;;  %v1707_v22 = vpack.c.bf16 %v1020_v14, %v1019_v10  ;;  %v925_v23 = vadd.f32 %v2202_v21, %v854_v15  ;;  %v957_v24 = vadd.f32 %v2202_v21, %v886_v16 }
 0x175   :  { %v679_v25 = vpop.f32.mrf.mxu0  ;;  %v807_v26 = vpop.f32.mrf.mxu1 }
 0x176   :  { %1731 = vst [vmem:[%s2431_s4 + $0x68] sm:$0xff] %v1627_v20   ;;  %1747 = vst [vmem:[%s2431_s4 + $0xe8] sm:$0xff] %v1707_v22   ;;  %v855_v27 = vmul.f32 %v2196_v17, %v679_v25  ;;  %v887_v28 = vmul.f32 %v2196_v17, %v807_v26  ;;  %v989_v33 = vmax.f32 %v925_v23, 0.0  ;;  %v1021_v34 = vmax.f32 %v957_v24, 0.0 }
 0x177   :  { %v681_v29 = vpop.f32.mrf.mxu0  ;;  %v809_v30 = vpop.f32.mrf.mxu1 }
 0x178   :  { %v926_v31 = vadd.f32 %v2202_v21, %v855_v27  ;;  %v958_v32 = vadd.f32 %v2202_v21, %v887_v28 }
 0x179   :  { %v684_v35 = vpop.f32.mrf.mxu0  ;;  %v812_v36 = vpop.f32.mrf.mxu1 }
 0x17a   :  { %v990_v37 = vmax.f32 %v926_v31, 0.0  ;;  %v1022_v38 = vmax.f32 %v958_v32, 0.0  ;;  %v856_v39 = vmul.f32 %v2196_v17, %v684_v35  ;;  %v888_v40 = vmul.f32 %v2196_v17, %v812_v36 }
 0x17b   :  { %v686_v41 = vpop.f32.mrf.mxu0  ;;  %v814_v42 = vpop.f32.mrf.mxu1 }
 0x17c   :  { %v1632_v43 = vpack.c.bf16 %v990_v37, %v989_v33  ;;  %v1712_v44 = vpack.c.bf16 %v1022_v38, %v1021_v34  ;;  %v927_v47 = vadd.f32 %v2202_v21, %v856_v39  ;;  %v959_v48 = vadd.f32 %v2202_v21, %v888_v40 }
 0x17d   :  { %v687_v45 = vpop.f32.mrf.mxu0  ;;  %v815_v46 = vpop.f32.mrf.mxu1 }
 0x17e   :  { %1732 = vst [vmem:[%s2431_s4 + $0x70] sm:$0xff] %v1632_v43   ;;  %1748 = vst [vmem:[%s2431_s4 + $0xf0] sm:$0xff] %v1712_v44   ;;  %v857_v49 = vmul.f32 %v2196_v17, %v687_v45  ;;  %v889_v50 = vmul.f32 %v2196_v17, %v815_v46  ;;  %v991_v55 = vmax.f32 %v927_v47, 0.0  ;;  %v1023_v56 = vmax.f32 %v959_v48, 0.0 }
 0x17f   :  { %v689_v51 = vpop.f32.mrf.mxu0  ;;  %v817_v52 = vpop.f32.mrf.mxu1 }
 0x180   :  { %v928_v53 = vadd.f32 %v2202_v21, %v857_v49  ;;  %v960_v54 = vadd.f32 %v2202_v21, %v889_v50 }
 0x182   :  { %v992_v57 = vmax.f32 %v928_v53, 0.0  ;;  %v1024_v58 = vmax.f32 %v960_v54, 0.0 }
 0x184   :  { %v1637_v59 = vpack.c.bf16 %v992_v57, %v991_v55  ;;  %v1717_v60 = vpack.c.bf16 %v1024_v58, %v1023_v56 }
 0x186   :  { %1733 = vst [vmem:[%s2431_s4 + $0x78] sm:$0xff] %v1637_v59   ;;  %1749 = vst [vmem:[%s2431_s4 + $0xf8] sm:$0xff] %v1717_v60  }

</bundles_post_ra>
